<compile_context>
chip_gen: v5e
topology: v5e:2x2
jax: 0.10.0
libtpu: 0.0.40
codegen_flags: <defaults>
</compile_context>

<pallas_src>
import jax
import jax.numpy as jnp
from jax.experimental import pallas as pl
from jax.experimental.pallas import tpu as pltpu

LANE = 128  # TPU vreg lane width


def mlp_kernel(x_ref, w1_ref, b1_ref, w2_ref, b2_ref, out_ref):
    # Hidden layer: Linear + ReLU (MXU matmul with fp32 accumulation, VPU bias/relu)
    h = jnp.dot(x_ref[...], w1_ref[...], preferred_element_type=jnp.float32)
    h = jnp.maximum(h + b1_ref[...], 0.0)
    # Output layer: Linear (logits, no activation — matches the module)
    o = jnp.dot(h, w2_ref[...], preferred_element_type=jnp.float32)
    out_ref[...] = (o + b2_ref[...]).astype(out_ref.dtype)


def net_forward(x, w1, b1, w2, b2, *, batch_tile=256):
    """Forward pass of Net.

    x : (batch, obs_size) float32
    w1: (obs_size, hidden) float32     b1: (hidden,) float32
    w2: (hidden, n_actions) float32    b2: (n_actions,) float32
    returns (batch, n_actions) float32 logits
    """
    batch, obs_size = x.shape
    hidden_size = w1.shape[1]
    n_actions = w2.shape[1]

    # Lane-dense output: pad the second-matmul output dim up to a multiple of
    # 128 by zero-padding w2/b2 columns (zero columns add exact zeros, then
    # get sliced off), so the kernel's final store is unmasked / full-lane.
    n_pad = pl.cdiv(n_actions, LANE) * LANE
    b1r = b1.reshape(1, hidden_size)
    w2p = jnp.pad(w2, ((0, 0), (0, n_pad - n_actions)))
    b2p = jnp.pad(b2.reshape(1, n_actions), ((0, 0), (0, n_pad - n_actions)))

    if batch <= batch_tile:
        # Single-shot: everything lives in VMEM, no grid, no pipeline emitter.
        out = pl.pallas_call(
            mlp_kernel,
            out_shape=jax.ShapeDtypeStruct((batch, n_pad), jnp.float32),
            in_specs=[pl.BlockSpec(memory_space=pltpu.MemorySpace.VMEM)] * 5,
            out_specs=pl.BlockSpec(memory_space=pltpu.MemorySpace.VMEM),
        )(x, w1, b1r, w2p, b2p)
        return out[:, :n_actions]

    # Large batch: tile only the batch axis. Weights/biases are indexed with
    # (0, 0) for every grid step, so they are loaded once and stay resident in
    # VMEM; only x tiles and out tiles stream through HBM.
    n_tiles = pl.cdiv(batch, batch_tile)
    padded_batch = n_tiles * batch_tile
    xp = x if padded_batch == batch else jnp.pad(
        x, ((0, padded_batch - batch), (0, 0)))

    out = pl.pallas_call(
        mlp_kernel,
        out_shape=jax.ShapeDtypeStruct((padded_batch, n_pad), jnp.float32),
        grid=(n_tiles,),
        in_specs=[
            pl.BlockSpec((batch_tile, obs_size), lambda i: (i, 0)),
            pl.BlockSpec((obs_size, hidden_size), lambda i: (0, 0)),
            pl.BlockSpec((1, hidden_size), lambda i: (0, 0)),
            pl.BlockSpec((hidden_size, n_pad), lambda i: (0, 0)),
            pl.BlockSpec((1, n_pad), lambda i: (0, 0)),
        ],
        out_specs=pl.BlockSpec((batch_tile, n_pad), lambda i: (i, 0)),
        compiler_params=pltpu.CompilerParams(
            dimension_semantics=("parallel",)),  # both TCs on v7x
    )(xp, w1, b1r, w2p, b2p)
    return out[:batch, :n_actions]


def init_params(key, obs_size, hidden_size, n_actions):
    # Deterministic synthetic init (roughly like PyTorch's uniform fan-in init).
    k1, k2, k3, k4 = jax.random.split(key, 4)
    bound1 = 1.0 / jnp.sqrt(obs_size)
    bound2 = 1.0 / jnp.sqrt(hidden_size)
    w1 = jax.random.uniform(k1, (obs_size, hidden_size), jnp.float32,
                            -bound1, bound1)
    b1 = jax.random.uniform(k2, (hidden_size,), jnp.float32, -bound1, bound1)
    w2 = jax.random.uniform(k3, (hidden_size, n_actions), jnp.float32,
                            -bound2, bound2)
    b2 = jax.random.uniform(k4, (n_actions,), jnp.float32, -bound2, bound2)
    return w1, b1, w2, b2


def _ref(x, w1, b1, w2, b2):
    return jnp.maximum(x @ w1 + b1, 0.0) @ w2 + b2


if __name__ == "__main__":
    # FrozenLake-like sizes: 16 one-hot observations, 4 actions, small hidden.
    obs_size, hidden_size, n_actions = 16, 32, 4

    key = jax.random.PRNGKey(0)
    kx, kp, kb = jax.random.split(key, 3)
    w1, b1, w2, b2 = init_params(kp, obs_size, hidden_size, n_actions)

    # 1) Small-batch path (no grid, whole problem in VMEM).
    x_small = jax.random.normal(kx, (8, obs_size), jnp.float32)
    out_small = net_forward(x_small, w1, b1, w2, b2)
    jax.block_until_ready(out_small)
    assert out_small.shape == (8, n_actions)
    assert jnp.allclose(out_small, _ref(x_small, w1, b1, w2, b2),
                        atol=1e-5, rtol=1e-5)

    # 2) Batch-tiled path (grid over batch only, weights resident in VMEM,
    #    non-multiple batch exercises the pad/slice logic).
    x_big = jax.random.normal(kb, (300, obs_size), jnp.float32)
    out_big = net_forward(x_big, w1, b1, w2, b2, batch_tile=128)
    jax.block_until_ready(out_big)
    assert out_big.shape == (300, n_actions)
    assert jnp.allclose(out_big, _ref(x_big, w1, b1, w2, b2),
                        atol=1e-5, rtol=1e-5)

    print("KERNEL_OK")
</pallas_src>

<mosaic_0001>
module attributes {stable_mosaic.version = 11 : i64} {
  func.func @mlp_kernel(%arg0: memref<8x16xf32, #tpu.memory_space<vmem>>, %arg1: memref<16x32xf32, #tpu.memory_space<vmem>>, %arg2: memref<1x32xf32, #tpu.memory_space<vmem>>, %arg3: memref<32x128xf32, #tpu.memory_space<vmem>>, %arg4: memref<1x128xf32, #tpu.memory_space<vmem>>, %arg5: memref<8x128xf32, #tpu.memory_space<vmem>>) attributes {dimension_semantics = [], scalar_prefetch = 0 : i64, scratch_operands = 0 : i64, tpu.core_type = #tpu.core_type<tc>} {
    %c0 = arith.constant 0 : index
    %c0_0 = arith.constant 0 : index
    %0 = vector.load %arg0[%c0, %c0_0] : memref<8x16xf32, #tpu.memory_space<vmem>>, vector<8x16xf32>
    %c0_1 = arith.constant 0 : index
    %c0_2 = arith.constant 0 : index
    %1 = vector.load %arg1[%c0_1, %c0_2] : memref<16x32xf32, #tpu.memory_space<vmem>>, vector<16x32xf32>
    %cst = arith.constant dense<0.000000e+00> : vector<8x32xf32>
    %2 = tpu.matmul %0, %1, %cst {dimension_numbers = #tpu.dot_dimension_numbers<[1], [0], [0], [1], [0, 0, 1, 1], [], []>} : vector<8x16xf32>, vector<16x32xf32>, vector<8x32xf32> -> vector<8x32xf32>
    %c0_3 = arith.constant 0 : index
    %c0_4 = arith.constant 0 : index
    %3 = vector.load %arg2[%c0_3, %c0_4] : memref<1x32xf32, #tpu.memory_space<vmem>>, vector<1x32xf32>
    %4 = vector.broadcast %3 : vector<1x32xf32> to vector<8x32xf32>
    %5 = arith.addf %2, %4 : vector<8x32xf32>
    %cst_5 = arith.constant 0.000000e+00 : f32
    %6 = vector.broadcast %cst_5 : f32 to vector<8x32xf32>
    %7 = arith.maximumf %5, %6 : vector<8x32xf32>
    %c0_6 = arith.constant 0 : index
    %c0_7 = arith.constant 0 : index
    %8 = vector.load %arg3[%c0_6, %c0_7] : memref<32x128xf32, #tpu.memory_space<vmem>>, vector<32x128xf32>
    %cst_8 = arith.constant dense<0.000000e+00> : vector<8x128xf32>
    %9 = tpu.matmul %7, %8, %cst_8 {dimension_numbers = #tpu.dot_dimension_numbers<[1], [0], [0], [1], [0, 0, 1, 1], [], []>} : vector<8x32xf32>, vector<32x128xf32>, vector<8x128xf32> -> vector<8x128xf32>
    %c0_9 = arith.constant 0 : index
    %c0_10 = arith.constant 0 : index
    %10 = vector.load %arg4[%c0_9, %c0_10] : memref<1x128xf32, #tpu.memory_space<vmem>>, vector<1x128xf32>
    %11 = vector.broadcast %10 : vector<1x128xf32> to vector<8x128xf32>
    %12 = arith.addf %9, %11 : vector<8x128xf32>
    %c0_11 = arith.constant 0 : index
    %c0_12 = arith.constant 0 : index
    %13 = vector.load %arg5[%c0_11, %c0_12] : memref<8x128xf32, #tpu.memory_space<vmem>>, vector<8x128xf32>
    tpu.vector_store %arg5[%c0_11, %c0_12], %12 {strides = array<i32>} : memref<8x128xf32, #tpu.memory_space<vmem>>, vector<8x128xf32>,
    return
  }
}

</mosaic_0001>

<bundles_post_ra>
// kernel: tpu_custom_call.1
= control target key start
LH: loop header
LB: loop body
LE: loop exit
PB: predicated region body
PF: predicated region fallthrough
CT: control target
= control target key end

     0   :  { %10 = vsyncpa [#allocation3], 0  ;;  %s315_s0 = inlined_call_operand.hbm [shape: f32[8,16], index: 0, kind: input, shape index: {}]   ;;  %s316_s1 = inlined_call_operand.hbm [shape: f32[16,32], index: 1, kind: input, shape index: {}]   ;;  %s317_s2 = inlined_call_operand.vmem [shape: f32[1,32], index: 2, kind: input, shape index: {}]   ;;  %s318_s3 = inlined_call_operand.hbm [shape: f32[32,128], index: 3, kind: input, shape index: {}]   ;;  %s319_s4 = inlined_call_operand.vmem [shape: f32[1,128], index: 4, kind: input, shape index: {}]   ;;  %s320_s5 = inlined_call_operand.hbm [shape: f32[8,128], index: 5, kind: output, shape index: {}]  }
   0x1   :  { %11 = vsyncpa [#allocation6], 0  ;;  %s28_s20 = sshll.u32 %s316_s1, 4  ;;  %s29_s20 = int_to_ptr.hbm [resolvable:$true] %s28_s20 }
   0x2   :  { %12 = vsyncpa [#allocation4], 0  ;;  %s261_s21 = smov [#allocation5]   ;;  %s18_s25 = sshll.u32 %s315_s0, 4  ;;  %s19_s25 = int_to_ptr.hbm [resolvable:$true] %s18_s25 }
   0x3   :  { %s30_s22 = sshll.u32 %s261_s21, 4  ;;  %s262_s26 = smov 128   ;;  %s31_s22 = int_to_ptr.vmem [resolvable:$true] %s30_s22 }
   0x4   :  { %s263_s27 = smov 8   ;;  %s264_s28 = smov [#allocation2]  }
   0x5   :  { %36 = dma.hbm_to_vmem [thread:$0]  %s29_s20, 256, %s31_s22, [#allocation6], %s262_s26, %s262_s26, %s263_s27  }
   0x6   :  { %s20_s29 = sshll.u32 %s264_s28, 4  ;;  %s43_s7 = sshll.u32 %s318_s3, 4  ;;  %s21_s29 = int_to_ptr.vmem [resolvable:$true] %s20_s29  ;;  %s44_s7 = int_to_ptr.hbm [resolvable:$true] %s43_s7 }
   0x7   :  { %23 = dma.hbm_to_vmem [thread:$0]  %s19_s25, 128, %s21_s29, [#allocation3]  }
   0x8   :  { %s265_s1 = smov [#allocation7]  }
   0x9   :  { %s45_s8 = sshll.u32 %s265_s1, 4  ;;  %s46_s8 = int_to_ptr.vmem [resolvable:$true] %s45_s8 }
   0xa   :  { %51 = dma.hbm_to_vmem [thread:$0]  %s44_s7, 512, %s46_s8, [#allocation6], %s262_s26, %s262_s26, %s263_s27  }
   0xb   :  { %255 = dma.done.wait [#allocation3], 128  }
   0xc   :  { %256 = vsyncadd [#allocation3], 4294967168 }
   0xd   :  { %257 = dma.done.wait [#allocation6], 768  }
   0xe   :  { %258 = vsyncadd [#allocation6], 4294966528  ;;  %v68_v0 = vld [vmem:[#allocation5 + $0x8] sm:$0xff]  ;;  %v67_v1 = vld [vmem:[#allocation5] sm:$0xff]  ;;  %vm73_vm0 = vcmask 130048   ;;  %vm106_vm1 = vcmask 261120  }
   0xf   :  { %91 = vmatpush.msra.mxu0 %v68_v0  ;;  %v66_v2 = vld [vmem:[#allocation2] sm:$0xff]  ;;  %v101_v3 = vld [vmem:[#allocation7 + $0x18] sm:$0xff]  ;;  %v100_v4 = vld [vmem:[#allocation7 + $0x10] sm:$0xff]  ;;  %s266_s11 = smov [#allocation8]   ;;  %s138_s15 = sshll.u32 %s320_s5, 4  ;;  %s139_s15 = int_to_ptr.hbm [resolvable:$true] %s138_s15 }
  0x10   :  { %122 = vmatpush.msra.mxu1 %v101_v3  ;;  %v99_v5 = vld [vmem:[#allocation7 + $0x8] sm:$0xff]  ;;  %v98_v6 = vld [vmem:[#allocation7] sm:$0xff]  ;;  %s136_s12 = sshll.u32 %s266_s11, 4  ;;  %s137_s12 = int_to_ptr.vmem [resolvable:$true] %s136_s12 }
  0x11   :  { %92 = vmatpush.msra.mxu0 %v67_v1  ;;  %v157_v7 = vld [vmem:[%s317_s2] ss:$0 sm:$0xff] }
  0x12   :  { %149 = vmatmul.msk.f32.vlgmr.msra.gmra.mxu0 %vm73_vm0, %v66_v2  ;;  %123 = vmatpush.msra.mxu1 %v100_v4  ;;  %v158_v11 = vld [vmem:[%s319_s4] ss:$0 sm:$0xff] }
  0x14   :  { %124 = vmatpush.msra.mxu1 %v99_v5 }
  0x16   :  { %125 = vmatpush.msra.mxu1 %v98_v6 }
  0x8f   :  { %v94_v8 = vpop.f32.mrf.mxu0 }
  0x90   :  { %v95_v9 = vadd.f32 %v157_v7, %v94_v8 }
  0x92   :  { %v97_v10 = vmax.f32 %v95_v9, 0.0 }
  0x94   :  { %150 = vmatmul.msk.f32.vlgmr.msra.gmra.mxu1 %vm106_vm1, %v97_v10 }
 0x111   :  { %v127_v12 = vpop.f32.mrf.mxu1 }
 0x112   :  { %v128_v13 = vadd.f32 %v158_v11, %v127_v12 }
 0x114   :  { %130 = vst [vmem:[#allocation8] sm:$0xff] %v128_v13 }
 0x115   :  { %141 = dma.vmem_to_hbm [thread:$0]  %s137_s12, 128, %s139_s15, [#allocation4]  }
 0x116   :  { %259 = dma.done.wait [#allocation4], 128  }
 0x117   :  { %260 = vsyncadd [#allocation4], 4294967168 }
 0x118   :  { %146 = vsyncpa [#allocation3], 1 }
 0x119   :  { %147 = vsyncpa [#allocation6], 1 }
 0x11a   :  { %148 = vsyncpa [#allocation4], 1 }

</bundles_post_ra>
